<compile_context>
chip_gen: v7x
topology: tpu7x:2x2x1
jax: 0.10.0
libtpu: 0.0.40
codegen_flags: <defaults>
</compile_context>

<pallas_src>
import functools
import math

import jax
import jax.numpy as jnp
from jax import lax
from jax.experimental import pallas as pl
from jax.experimental.pallas import tpu as pltpu

EPS = 1e-5
INV_SQRT2 = 1.0 / math.sqrt(2.0)
N_HIDDEN = 5  # number of Linear->BN->GELU blocks before the final Linear


def _round_up(v, m):
    return ((v + m - 1) // m) * m


def _tpu_generation():
    """5 / 6 / 7 from the device kind string; defaults to 6 if unknown."""
    try:
        kind = jax.devices()[0].device_kind.lower()
    except Exception:
        return 6
    for g in (7, 6, 5):
        if f"v{g}" in kind:
            return g
    return 6


def _lane_granularity(max_dim, gen):
    # v6e/v7x MXU is 2x256x256: pad K/N to 256 when the dims are big enough to matter.
    # v5e (4x128x128) and tiny dims stay at 128.
    if gen >= 6 and max_dim > 128:
        return 256
    return 128


def _vmem_limit_bytes(param_bytes, act_bytes, gen):
    cap = (48 << 20) if gen >= 7 else (100 << 20)   # v7x: 64 MiB physical VMEM
    need = 2 * param_bytes + 6 * act_bytes + (4 << 20)
    return int(min(max(need, 16 << 20), cap))


def _gelu_exact(x):
    # nn.GELU() default: 0.5 * x * (1 + erf(x / sqrt(2)))
    return 0.5 * x * (1.0 + lax.erf(x * INV_SQRT2))


# -----------------------------------------------------------------------------
# Kernel
# -----------------------------------------------------------------------------
def fcn5_kernel(x_ref, w_ref, s_ref, o_ref, *, n_rows):
    """x_ref: (N, D) compute dtype.  w_ref: (6, D, D) compute dtype.
    s_ref: (11, D) f32  [rows 0..4 gamma, 5..9 beta, 10 b5].  o_ref: (N, D) f32."""
    inv_n = jnp.float32(1.0 / n_rows)
    s = s_ref[...]                                    # small, load once
    h = x_ref[...]                                    # (N, D) in compute dtype

    for i in range(N_HIDDEN):
        # Linear (pre-BN bias dropped: exactly cancelled by the mean subtraction below).
        z = jnp.dot(h, w_ref[i], preferred_element_type=jnp.float32)      # (N, D) f32
        # One-pass training-mode BN stats: sum and sum-of-squares in a single sweep.
        mean = jnp.sum(z, axis=0, keepdims=True) * inv_n                  # (1, D)
        mean_sq = jnp.sum(z * z, axis=0, keepdims=True) * inv_n           # (1, D)
        var = jnp.maximum(mean_sq - mean * mean, 0.0)                     # biased variance
        gamma = s[i:i + 1, :]
        beta = s[N_HIDDEN + i:N_HIDDEN + i + 1, :]
        scale = gamma * lax.rsqrt(var + EPS)
        shift = beta - mean * scale
        # BN apply fused to scale/shift + exact GELU (f32), cast back to compute dtype
        # for the next layer's MXU matmul.
        h = _gelu_exact(z * scale + shift).astype(h.dtype)

    b5 = s[2 * N_HIDDEN:2 * N_HIDDEN + 1, :]
    out = jnp.dot(h, w_ref[N_HIDDEN], preferred_element_type=jnp.float32) + b5
    o_ref[...] = out.astype(o_ref.dtype)


# -----------------------------------------------------------------------------
# Wrapper
# -----------------------------------------------------------------------------
def _vmem_spec():
    return pl.BlockSpec(memory_space=pltpu.MemorySpace.VMEM)


@functools.partial(jax.jit, static_argnums=(3,))
def fcn5_forward(x, w_stack, scalars, out_channels):
    """x: (N, in_channels). w_stack/scalars from prepare_kernel_params."""
    n = x.shape[0]
    d = w_stack.shape[1]
    if x.shape[1] != d:
        x = jnp.pad(x, ((0, 0), (0, d - x.shape[1])))
    x = x.astype(w_stack.dtype)                       # single cast in the wrapper

    gen = _tpu_generation()
    param_bytes = int(w_stack.size) * w_stack.dtype.itemsize + int(scalars.size) * 4
    act_bytes = n * d * 4
    flops = 2 * n * d * d * (N_HIDDEN + 1)
    transcendentals = N_HIDDEN * n * d               # erf per hidden activation

    out_p = pl.pallas_call(
        functools.partial(fcn5_kernel, n_rows=n),
        out_shape=jax.ShapeDtypeStruct((n, d), jnp.float32),
        in_specs=[_vmem_spec(), _vmem_spec(), _vmem_spec()],
        out_specs=_vmem_spec(),
        compiler_params=pltpu.CompilerParams(
            vmem_limit_bytes=_vmem_limit_bytes(param_bytes, act_bytes, gen)),
        cost_estimate=pl.CostEstimate(
            flops=flops, transcendentals=transcendentals,
            bytes_accessed=param_bytes + act_bytes + n * d * 4),
    )(x, w_stack, scalars)
    return out_p[:, :out_channels]


# -----------------------------------------------------------------------------
# Parameters (PyTorch-style init + lane-padded, stacked layout)
# -----------------------------------------------------------------------------
def init_raw_params(key, in_channels, mid_channels, out_channels):
    """PyTorch defaults: Linear W,b ~ U(+-1/sqrt(fan_in)); BN gamma=1, beta=0."""
    dims = [(in_channels, mid_channels)] + [(mid_channels, mid_channels)] * 4 \
           + [(mid_channels, out_channels)]
    linears, bns = [], []
    for i, (fan_in, fan_out) in enumerate(dims):
        key, kw, kb = jax.random.split(key, 3)
        bound = 1.0 / math.sqrt(fan_in)
        w = jax.random.uniform(kw, (fan_out, fan_in), jnp.float32, -bound, bound)
        b = jax.random.uniform(kb, (fan_out,), jnp.float32, -bound, bound)
        linears.append((w, b))
        if i < N_HIDDEN:
            bns.append((jnp.ones((fan_out,), jnp.float32),
                        jnp.zeros((fan_out,), jnp.float32)))
    return linears, bns


def prepare_kernel_params(linears, bns, compute_dtype=None):
    """Single (6, D, D) weight stack (transposed to (in, out), zero-padded to a common
    lane-aligned D, cast to compute_dtype) and a single (11, D) f32 scalar stack.
    Pre-BN biases are dropped (cancelled by BN mean subtraction)."""
    gen = _tpu_generation()
    if compute_dtype is None:
        compute_dtype = jnp.bfloat16        # MXU-rate dtype with f32 accumulation
    max_dim = max(max(w.shape) for (w, _) in linears)
    d = _round_up(max_dim, _lane_granularity(max_dim, gen))

    w_stack = jnp.zeros((len(linears), d, d), jnp.float32)
    for i, (w, _) in enumerate(linears):
        fo, fi = w.shape
        w_stack = w_stack.at[i, :fi, :fo].set(w.T)
    w_stack = w_stack.astype(compute_dtype)

    scalars = jnp.zeros((2 * N_HIDDEN + 1, d), jnp.float32)
    for i, (g, be) in enumerate(bns):
        scalars = scalars.at[i, :g.shape[0]].set(g)             # padded lanes keep gamma=0
        scalars = scalars.at[N_HIDDEN + i, :be.shape[0]].set(be)
    b5 = linears[-1][1]
    scalars = scalars.at[2 * N_HIDDEN, :b5.shape[0]].set(b5)
    return w_stack, scalars


# -----------------------------------------------------------------------------
# Pure-JAX references
# -----------------------------------------------------------------------------
def reference_torch_semantics(x, linears, bns):
    """Exact PyTorch training-mode forward (all biases, two-pass BN variance)."""
    h = x.astype(jnp.float32)
    for i, (w, b) in enumerate(linears):
        h = h @ w.T + b
        if i < len(bns):
            g, be = bns[i]
            mean = jnp.mean(h, axis=0, keepdims=True)
            var = jnp.mean((h - mean) ** 2, axis=0, keepdims=True)
            h = (h - mean) / jnp.sqrt(var + EPS) * g + be
            h = _gelu_exact(h)
    return h


def reference_padded(x, w_stack, scalars, out_channels):
    """Mirrors the kernel's math/dtype flow exactly (used for the bf16-weights check)."""
    d = w_stack.shape[1]
    n = x.shape[0]
    h = jnp.pad(x, ((0, 0), (0, d - x.shape[1]))).astype(w_stack.dtype)
    for i in range(N_HIDDEN):
        z = jnp.dot(h, w_stack[i], preferred_element_type=jnp.float32)
        mean = jnp.sum(z, axis=0, keepdims=True) / n
        mean_sq = jnp.sum(z * z, axis=0, keepdims=True) / n
        var = jnp.maximum(mean_sq - mean * mean, 0.0)
        scale = scalars[i:i + 1, :] * lax.rsqrt(var + EPS)
        shift = scalars[N_HIDDEN + i:N_HIDDEN + i + 1, :] - mean * scale
        h = _gelu_exact(z * scale + shift).astype(h.dtype)
    out = jnp.dot(h, w_stack[N_HIDDEN], preferred_element_type=jnp.float32) \
          + scalars[2 * N_HIDDEN:2 * N_HIDDEN + 1, :]
    return out[:, :out_channels]


# -----------------------------------------------------------------------------
# Test
# -----------------------------------------------------------------------------
if __name__ == "__main__":
    batch, in_channels, mid_channels, out_channels = 8, 16, 32, 4

    key = jax.random.PRNGKey(0)
    key, kx = jax.random.split(key)
    x = jax.random.normal(kx, (batch, in_channels), jnp.float32)
    linears, bns = init_raw_params(key, in_channels, mid_channels, out_channels)

    ref = reference_torch_semantics(x, linears, bns)

    # --- f32 weights: checked against exact PyTorch-semantics reference ---
    w_f32, s_f32 = prepare_kernel_params(linears, bns, jnp.float32)
    out_f32 = jax.block_until_ready(fcn5_forward(x, w_f32, s_f32, out_channels))
    assert out_f32.shape == (batch, out_channels), out_f32.shape
    assert jnp.allclose(out_f32, ref, atol=5e-4, rtol=5e-4), \
        f"f32 max abs err {jnp.max(jnp.abs(out_f32 - ref))}"

    # --- bf16 weights + input (default, MXU-rate path): dtype-matched reference ---
    w_bf16, s_bf16 = prepare_kernel_params(linears, bns)            # default bf16
    out_bf16 = jax.block_until_ready(fcn5_forward(x, w_bf16, s_bf16, out_channels))
    ref_bf16 = reference_padded(x, w_bf16, s_bf16, out_channels)
    assert out_bf16.shape == (batch, out_channels), out_bf16.shape
    assert jnp.allclose(out_bf16, ref_bf16, atol=2e-3, rtol=2e-3), \
        f"bf16 max abs err {jnp.max(jnp.abs(out_bf16 - ref_bf16))}"

    print("KERNEL_OK")
</pallas_src>

<mosaic_0001>
module attributes {stable_mosaic.version = 11 : i64} {
  func.func @fcn5_kernel(%arg0: memref<8x128xf32, #tpu.memory_space<vmem>>, %arg1: memref<6x128x128xf32, #tpu.memory_space<vmem>>, %arg2: memref<11x128xf32, #tpu.memory_space<vmem>>, %arg3: memref<8x128xf32, #tpu.memory_space<vmem>>) attributes {dimension_semantics = [], scalar_prefetch = 0 : i64, scratch_operands = 0 : i64, tpu.core_type = #tpu.core_type<tc>} {
    %c0 = arith.constant 0 : index
    %c0_0 = arith.constant 0 : index
    %0 = vector.load %arg2[%c0, %c0_0] : memref<11x128xf32, #tpu.memory_space<vmem>>, vector<11x128xf32>
    %c0_1 = arith.constant 0 : index
    %c0_2 = arith.constant 0 : index
    %1 = vector.load %arg0[%c0_1, %c0_2] : memref<8x128xf32, #tpu.memory_space<vmem>>, vector<8x128xf32>
    %c0_3 = arith.constant 0 : index
    %c0_4 = arith.constant 0 : index
    %c0_5 = arith.constant 0 : index
    %2 = vector.load %arg1[%c0_3, %c0_4, %c0_5] : memref<6x128x128xf32, #tpu.memory_space<vmem>>, vector<1x128x128xf32>
    %3 = vector.shape_cast %2 : vector<1x128x128xf32> to vector<128x128xf32>
    %cst = arith.constant dense<0.000000e+00> : vector<8x128xf32>
    %4 = tpu.matmul %1, %3, %cst {dimension_numbers = #tpu.dot_dimension_numbers<[1], [0], [0], [1], [0, 0, 1, 1], [], []>} : vector<8x128xf32>, vector<128x128xf32>, vector<8x128xf32> -> vector<8x128xf32>
    %cst_6 = arith.constant dense<0.000000e+00> : vector<128xf32>
    %5 = vector.multi_reduction <add>, %4, %cst_6 [0] : vector<8x128xf32> to vector<128xf32>
    %6 = vector.shape_cast %5 : vector<128xf32> to vector<1x128xf32>
    %cst_7 = arith.constant 1.250000e-01 : f32
    %7 = vector.broadcast %cst_7 : f32 to vector<1x128xf32>
    %8 = arith.mulf %6, %7 : vector<1x128xf32>
    %9 = arith.mulf %4, %4 : vector<8x128xf32>
    %cst_8 = arith.constant dense<0.000000e+00> : vector<128xf32>
    %10 = vector.multi_reduction <add>, %9, %cst_8 [0] : vector<8x128xf32> to vector<128xf32>
    %11 = vector.shape_cast %10 : vector<128xf32> to vector<1x128xf32>
    %cst_9 = arith.constant 1.250000e-01 : f32
    %12 = vector.broadcast %cst_9 : f32 to vector<1x128xf32>
    %13 = arith.mulf %11, %12 : vector<1x128xf32>
    %14 = arith.mulf %8, %8 : vector<1x128xf32>
    %15 = arith.subf %13, %14 : vector<1x128xf32>
    %cst_10 = arith.constant 0.000000e+00 : f32
    %16 = vector.broadcast %cst_10 : f32 to vector<1x128xf32>
    %17 = arith.maximumf %15, %16 : vector<1x128xf32>
    %18 = vector.extract_strided_slice %0 {offsets = [0, 0], sizes = [1, 128], strides = [1, 1]} : vector<11x128xf32> to vector<1x128xf32>
    %19 = vector.extract_strided_slice %0 {offsets = [5, 0], sizes = [1, 128], strides = [1, 1]} : vector<11x128xf32> to vector<1x128xf32>
    %cst_11 = arith.constant 9.99999974E-6 : f32
    %20 = vector.broadcast %cst_11 : f32 to vector<1x128xf32>
    %21 = arith.addf %17, %20 : vector<1x128xf32>
    %22 = math.rsqrt %21 : vector<1x128xf32>
    %23 = arith.mulf %18, %22 : vector<1x128xf32>
    %24 = arith.mulf %8, %23 : vector<1x128xf32>
    %25 = arith.subf %19, %24 : vector<1x128xf32>
    %26 = vector.broadcast %23 : vector<1x128xf32> to vector<8x128xf32>
    %27 = arith.mulf %4, %26 : vector<8x128xf32>
    %28 = vector.broadcast %25 : vector<1x128xf32> to vector<8x128xf32>
    %29 = arith.addf %27, %28 : vector<8x128xf32>
    %cst_12 = arith.constant 5.000000e-01 : f32
    %30 = vector.broadcast %cst_12 : f32 to vector<8x128xf32>
    %31 = arith.mulf %30, %29 : vector<8x128xf32>
    %cst_13 = arith.constant 0.707106769 : f32
    %32 = vector.broadcast %cst_13 : f32 to vector<8x128xf32>
    %33 = arith.mulf %29, %32 : vector<8x128xf32>
    %34 = math.erf %33 : vector<8x128xf32>
    %cst_14 = arith.constant 1.000000e+00 : f32
    %35 = vector.broadcast %cst_14 : f32 to vector<8x128xf32>
    %36 = arith.addf %35, %34 : vector<8x128xf32>
    %37 = arith.mulf %31, %36 : vector<8x128xf32>
    %c1 = arith.constant 1 : index
    %c0_15 = arith.constant 0 : index
    %c0_16 = arith.constant 0 : index
    %38 = vector.load %arg1[%c1, %c0_15, %c0_16] : memref<6x128x128xf32, #tpu.memory_space<vmem>>, vector<1x128x128xf32>
    %39 = vector.shape_cast %38 : vector<1x128x128xf32> to vector<128x128xf32>
    %cst_17 = arith.constant dense<0.000000e+00> : vector<8x128xf32>
    %40 = tpu.matmul %37, %39, %cst_17 {dimension_numbers = #tpu.dot_dimension_numbers<[1], [0], [0], [1], [0, 0, 1, 1], [], []>} : vector<8x128xf32>, vector<128x128xf32>, vector<8x128xf32> -> vector<8x128xf32>
    %cst_18 = arith.constant dense<0.000000e+00> : vector<128xf32>
    %41 = vector.multi_reduction <add>, %40, %cst_18 [0] : vector<8x128xf32> to vector<128xf32>
    %42 = vector.shape_cast %41 : vector<128xf32> to vector<1x128xf32>
    %cst_19 = arith.constant 1.250000e-01 : f32
    %43 = vector.broadcast %cst_19 : f32 to vector<1x128xf32>
    %44 = arith.mulf %42, %43 : vector<1x128xf32>
    %45 = arith.mulf %40, %40 : vector<8x128xf32>
    %cst_20 = arith.constant dense<0.000000e+00> : vector<128xf32>
    %46 = vector.multi_reduction <add>, %45, %cst_20 [0] : vector<8x128xf32> to vector<128xf32>
    %47 = vector.shape_cast %46 : vector<128xf32> to vector<1x128xf32>
    %cst_21 = arith.constant 1.250000e-01 : f32
    %48 = vector.broadcast %cst_21 : f32 to vector<1x128xf32>
    %49 = arith.mulf %47, %48 : vector<1x128xf32>
    %50 = arith.mulf %44, %44 : vector<1x128xf32>
    %51 = arith.subf %49, %50 : vector<1x128xf32>
    %cst_22 = arith.constant 0.000000e+00 : f32
    %52 = vector.broadcast %cst_22 : f32 to vector<1x128xf32>
    %53 = arith.maximumf %51, %52 : vector<1x128xf32>
    %54 = vector.extract_strided_slice %0 {offsets = [1, 0], sizes = [1, 128], strides = [1, 1]} : vector<11x128xf32> to vector<1x128xf32>
    %55 = vector.extract_strided_slice %0 {offsets = [6, 0], sizes = [1, 128], strides = [1, 1]} : vector<11x128xf32> to vector<1x128xf32>
    %cst_23 = arith.constant 9.99999974E-6 : f32
    %56 = vector.broadcast %cst_23 : f32 to vector<1x128xf32>
    %57 = arith.addf %53, %56 : vector<1x128xf32>
    %58 = math.rsqrt %57 : vector<1x128xf32>
    %59 = arith.mulf %54, %58 : vector<1x128xf32>
    %60 = arith.mulf %44, %59 : vector<1x128xf32>
    %61 = arith.subf %55, %60 : vector<1x128xf32>
    %62 = vector.broadcast %59 : vector<1x128xf32> to vector<8x128xf32>
    %63 = arith.mulf %40, %62 : vector<8x128xf32>
    %64 = vector.broadcast %61 : vector<1x128xf32> to vector<8x128xf32>
    %65 = arith.addf %63, %64 : vector<8x128xf32>
    %cst_24 = arith.constant 5.000000e-01 : f32
    %66 = vector.broadcast %cst_24 : f32 to vector<8x128xf32>
    %67 = arith.mulf %66, %65 : vector<8x128xf32>
    %cst_25 = arith.constant 0.707106769 : f32
    %68 = vector.broadcast %cst_25 : f32 to vector<8x128xf32>
    %69 = arith.mulf %65, %68 : vector<8x128xf32>
    %70 = math.erf %69 : vector<8x128xf32>
    %cst_26 = arith.constant 1.000000e+00 : f32
    %71 = vector.broadcast %cst_26 : f32 to vector<8x128xf32>
    %72 = arith.addf %71, %70 : vector<8x128xf32>
    %73 = arith.mulf %67, %72 : vector<8x128xf32>
    %c2 = arith.constant 2 : index
    %c0_27 = arith.constant 0 : index
    %c0_28 = arith.constant 0 : index
    %74 = vector.load %arg1[%c2, %c0_27, %c0_28] : memref<6x128x128xf32, #tpu.memory_space<vmem>>, vector<1x128x128xf32>
    %75 = vector.shape_cast %74 : vector<1x128x128xf32> to vector<128x128xf32>
    %cst_29 = arith.constant dense<0.000000e+00> : vector<8x128xf32>
    %76 = tpu.matmul %73, %75, %cst_29 {dimension_numbers = #tpu.dot_dimension_numbers<[1], [0], [0], [1], [0, 0, 1, 1], [], []>} : vector<8x128xf32>, vector<128x128xf32>, vector<8x128xf32> -> vector<8x128xf32>
    %cst_30 = arith.constant dense<0.000000e+00> : vector<128xf32>
    %77 = vector.multi_reduction <add>, %76, %cst_30 [0] : vector<8x128xf32> to vector<128xf32>
    %78 = vector.shape_cast %77 : vector<128xf32> to vector<1x128xf32>
    %cst_31 = arith.constant 1.250000e-01 : f32
    %79 = vector.broadcast %cst_31 : f32 to vector<1x128xf32>
    %80 = arith.mulf %78, %79 : vector<1x128xf32>
    %81 = arith.mulf %76, %76 : vector<8x128xf32>
    %cst_32 = arith.constant dense<0.000000e+00> : vector<128xf32>
    %82 = vector.multi_reduction <add>, %81, %cst_32 [0] : vector<8x128xf32> to vector<128xf32>
    %83 = vector.shape_cast %82 : vector<128xf32> to vector<1x128xf32>
    %cst_33 = arith.constant 1.250000e-01 : f32
    %84 = vector.broadcast %cst_33 : f32 to vector<1x128xf32>
    %85 = arith.mulf %83, %84 : vector<1x128xf32>
    %86 = arith.mulf %80, %80 : vector<1x128xf32>
    %87 = arith.subf %85, %86 : vector<1x128xf32>
    %cst_34 = arith.constant 0.000000e+00 : f32
    %88 = vector.broadcast %cst_34 : f32 to vector<1x128xf32>
    %89 = arith.maximumf %87, %88 : vector<1x128xf32>
    %90 = vector.extract_strided_slice %0 {offsets = [2, 0], sizes = [1, 128], strides = [1, 1]} : vector<11x128xf32> to vector<1x128xf32>
    %91 = vector.extract_strided_slice %0 {offsets = [7, 0], sizes = [1, 128], strides = [1, 1]} : vector<11x128xf32> to vector<1x128xf32>
    %cst_35 = arith.constant 9.99999974E-6 : f32
    %92 = vector.broadcast %cst_35 : f32 to vector<1x128xf32>
    %93 = arith.addf %89, %92 : vector<1x128xf32>
    %94 = math.rsqrt %93 : vector<1x128xf32>
    %95 = arith.mulf %90, %94 : vector<1x128xf32>
    %96 = arith.mulf %80, %95 : vector<1x128xf32>
    %97 = arith.subf %91, %96 : vector<1x128xf32>
    %98 = vector.broadcast %95 : vector<1x128xf32> to vector<8x128xf32>
    %99 = arith.mulf %76, %98 : vector<8x128xf32>
    %100 = vector.broadcast %97 : vector<1x128xf32> to vector<8x128xf32>
    %101 = arith.addf %99, %100 : vector<8x128xf32>
    %cst_36 = arith.constant 5.000000e-01 : f32
    %102 = vector.broadcast %cst_36 : f32 to vector<8x128xf32>
    %103 = arith.mulf %102, %101 : vector<8x128xf32>
    %cst_37 = arith.constant 0.707106769 : f32
    %104 = vector.broadcast %cst_37 : f32 to vector<8x128xf32>
    %105 = arith.mulf %101, %104 : vector<8x128xf32>
    %106 = math.erf %105 : vector<8x128xf32>
    %cst_38 = arith.constant 1.000000e+00 : f32
    %107 = vector.broadcast %cst_38 : f32 to vector<8x128xf32>
    %108 = arith.addf %107, %106 : vector<8x128xf32>
    %109 = arith.mulf %103, %108 : vector<8x128xf32>
    %c3 = arith.constant 3 : index
    %c0_39 = arith.constant 0 : index
    %c0_40 = arith.constant 0 : index
    %110 = vector.load %arg1[%c3, %c0_39, %c0_40] : memref<6x128x128xf32, #tpu.memory_space<vmem>>, vector<1x128x128xf32>
    %111 = vector.shape_cast %110 : vector<1x128x128xf32> to vector<128x128xf32>
    %cst_41 = arith.constant dense<0.000000e+00> : vector<8x128xf32>
    %112 = tpu.matmul %109, %111, %cst_41 {dimension_numbers = #tpu.dot_dimension_numbers<[1], [0], [0], [1], [0, 0, 1, 1], [], []>} : vector<8x128xf32>, vector<128x128xf32>, vector<8x128xf32> -> vector<8x128xf32>
    %cst_42 = arith.constant dense<0.000000e+00> : vector<128xf32>
    %113 = vector.multi_reduction <add>, %112, %cst_42 [0] : vector<8x128xf32> to vector<128xf32>
    %114 = vector.shape_cast %113 : vector<128xf32> to vector<1x128xf32>
    %cst_43 = arith.constant 1.250000e-01 : f32
    %115 = vector.broadcast %cst_43 : f32 to vector<1x128xf32>
    %116 = arith.mulf %114, %115 : vector<1x128xf32>
    %117 = arith.mulf %112, %112 : vector<8x128xf32>
    %cst_44 = arith.constant dense<0.000000e+00> : vector<128xf32>
    %118 = vector.multi_reduction <add>, %117, %cst_44 [0] : vector<8x128xf32> to vector<128xf32>
    %119 = vector.shape_cast %118 : vector<128xf32> to vector<1x128xf32>
    %cst_45 = arith.constant 1.250000e-01 : f32
    %120 = vector.broadcast %cst_45 : f32 to vector<1x128xf32>
    %121 = arith.mulf %119, %120 : vector<1x128xf32>
    %122 = arith.mulf %116, %116 : vector<1x128xf32>
    %123 = arith.subf %121, %122 : vector<1x128xf32>
    %cst_46 = arith.constant 0.000000e+00 : f32
    %124 = vector.broadcast %cst_46 : f32 to vector<1x128xf32>
    %125 = arith.maximumf %123, %124 : vector<1x128xf32>
    %126 = vector.extract_strided_slice %0 {offsets = [3, 0], sizes = [1, 128], strides = [1, 1]} : vector<11x128xf32> to vector<1x128xf32>
    %127 = vector.extract_strided_slice %0 {offsets = [8, 0], sizes = [1, 128], strides = [1, 1]} : vector<11x128xf32> to vector<1x128xf32>
    %cst_47 = arith.constant 9.99999974E-6 : f32
    %128 = vector.broadcast %cst_47 : f32 to vector<1x128xf32>
    %129 = arith.addf %125, %128 : vector<1x128xf32>
    %130 = math.rsqrt %129 : vector<1x128xf32>
    %131 = arith.mulf %126, %130 : vector<1x128xf32>
    %132 = arith.mulf %116, %131 : vector<1x128xf32>
    %133 = arith.subf %127, %132 : vector<1x128xf32>
    %134 = vector.broadcast %131 : vector<1x128xf32> to vector<8x128xf32>
    %135 = arith.mulf %112, %134 : vector<8x128xf32>
    %136 = vector.broadcast %133 : vector<1x128xf32> to vector<8x128xf32>
    %137 = arith.addf %135, %136 : vector<8x128xf32>
    %cst_48 = arith.constant 5.000000e-01 : f32
    %138 = vector.broadcast %cst_48 : f32 to vector<8x128xf32>
    %139 = arith.mulf %138, %137 : vector<8x128xf32>
    %cst_49 = arith.constant 0.707106769 : f32
    %140 = vector.broadcast %cst_49 : f32 to vector<8x128xf32>
    %141 = arith.mulf %137, %140 : vector<8x128xf32>
    %142 = math.erf %141 : vector<8x128xf32>
    %cst_50 = arith.constant 1.000000e+00 : f32
    %143 = vector.broadcast %cst_50 : f32 to vector<8x128xf32>
    %144 = arith.addf %143, %142 : vector<8x128xf32>
    %145 = arith.mulf %139, %144 : vector<8x128xf32>
    %c4 = arith.constant 4 : index
    %c0_51 = arith.constant 0 : index
    %c0_52 = arith.constant 0 : index
    %146 = vector.load %arg1[%c4, %c0_51, %c0_52] : memref<6x128x128xf32, #tpu.memory_space<vmem>>, vector<1x128x128xf32>
    %147 = vector.shape_cast %146 : vector<1x128x128xf32> to vector<128x128xf32>
    %cst_53 = arith.constant dense<0.000000e+00> : vector<8x128xf32>
    %148 = tpu.matmul %145, %147, %cst_53 {dimension_numbers = #tpu.dot_dimension_numbers<[1], [0], [0], [1], [0, 0, 1, 1], [], []>} : vector<8x128xf32>, vector<128x128xf32>, vector<8x128xf32> -> vector<8x128xf32>
    %cst_54 = arith.constant dense<0.000000e+00> : vector<128xf32>
    %149 = vector.multi_reduction <add>, %148, %cst_54 [0] : vector<8x128xf32> to vector<128xf32>
    %150 = vector.shape_cast %149 : vector<128xf32> to vector<1x128xf32>
    %cst_55 = arith.constant 1.250000e-01 : f32
    %151 = vector.broadcast %cst_55 : f32 to vector<1x128xf32>
    %152 = arith.mulf %150, %151 : vector<1x128xf32>
    %153 = arith.mulf %148, %148 : vector<8x128xf32>
    %cst_56 = arith.constant dense<0.000000e+00> : vector<128xf32>
    %154 = vector.multi_reduction <add>, %153, %cst_56 [0] : vector<8x128xf32> to vector<128xf32>
    %155 = vector.shape_cast %154 : vector<128xf32> to vector<1x128xf32>
    %cst_57 = arith.constant 1.250000e-01 : f32
    %156 = vector.broadcast %cst_57 : f32 to vector<1x128xf32>
    %157 = arith.mulf %155, %156 : vector<1x128xf32>
    %158 = arith.mulf %152, %152 : vector<1x128xf32>
    %159 = arith.subf %157, %158 : vector<1x128xf32>
    %cst_58 = arith.constant 0.000000e+00 : f32
    %160 = vector.broadcast %cst_58 : f32 to vector<1x128xf32>
    %161 = arith.maximumf %159, %160 : vector<1x128xf32>
    %162 = vector.extract_strided_slice %0 {offsets = [4, 0], sizes = [1, 128], strides = [1, 1]} : vector<11x128xf32> to vector<1x128xf32>
    %163 = vector.extract_strided_slice %0 {offsets = [9, 0], sizes = [1, 128], strides = [1, 1]} : vector<11x128xf32> to vector<1x128xf32>
    %cst_59 = arith.constant 9.99999974E-6 : f32
    %164 = vector.broadcast %cst_59 : f32 to vector<1x128xf32>
    %165 = arith.addf %161, %164 : vector<1x128xf32>
    %166 = math.rsqrt %165 : vector<1x128xf32>
    %167 = arith.mulf %162, %166 : vector<1x128xf32>
    %168 = arith.mulf %152, %167 : vector<1x128xf32>
    %169 = arith.subf %163, %168 : vector<1x128xf32>
    %170 = vector.broadcast %167 : vector<1x128xf32> to vector<8x128xf32>
    %171 = arith.mulf %148, %170 : vector<8x128xf32>
    %172 = vector.broadcast %169 : vector<1x128xf32> to vector<8x128xf32>
    %173 = arith.addf %171, %172 : vector<8x128xf32>
    %cst_60 = arith.constant 5.000000e-01 : f32
    %174 = vector.broadcast %cst_60 : f32 to vector<8x128xf32>
    %175 = arith.mulf %174, %173 : vector<8x128xf32>
    %cst_61 = arith.constant 0.707106769 : f32
    %176 = vector.broadcast %cst_61 : f32 to vector<8x128xf32>
    %177 = arith.mulf %173, %176 : vector<8x128xf32>
    %178 = math.erf %177 : vector<8x128xf32>
    %cst_62 = arith.constant 1.000000e+00 : f32
    %179 = vector.broadcast %cst_62 : f32 to vector<8x128xf32>
    %180 = arith.addf %179, %178 : vector<8x128xf32>
    %181 = arith.mulf %175, %180 : vector<8x128xf32>
    %182 = vector.extract_strided_slice %0 {offsets = [10, 0], sizes = [1, 128], strides = [1, 1]} : vector<11x128xf32> to vector<1x128xf32>
    %c5 = arith.constant 5 : index
    %c0_63 = arith.constant 0 : index
    %c0_64 = arith.constant 0 : index
    %183 = vector.load %arg1[%c5, %c0_63, %c0_64] : memref<6x128x128xf32, #tpu.memory_space<vmem>>, vector<1x128x128xf32>
    %184 = vector.shape_cast %183 : vector<1x128x128xf32> to vector<128x128xf32>
    %cst_65 = arith.constant dense<0.000000e+00> : vector<8x128xf32>
    %185 = tpu.matmul %181, %184, %cst_65 {dimension_numbers = #tpu.dot_dimension_numbers<[1], [0], [0], [1], [0, 0, 1, 1], [], []>} : vector<8x128xf32>, vector<128x128xf32>, vector<8x128xf32> -> vector<8x128xf32>
    %186 = vector.broadcast %182 : vector<1x128xf32> to vector<8x128xf32>
    %187 = arith.addf %185, %186 : vector<8x128xf32>
    %c0_66 = arith.constant 0 : index
    %c0_67 = arith.constant 0 : index
    %188 = vector.load %arg3[%c0_66, %c0_67] : memref<8x128xf32, #tpu.memory_space<vmem>>, vector<8x128xf32>
    tpu.vector_store %arg3[%c0_66, %c0_67], %187 {strides = array<i32>} : memref<8x128xf32, #tpu.memory_space<vmem>>, vector<8x128xf32>,
    return
  }
}

</mosaic_0001>

<bundles_post_ra>
// kernel: fcn5_forward.1
= control target key start
LH: loop header
LB: loop body
LE: loop exit
PB: predicated region body
PF: predicated region fallthrough
CT: control target
= control target key end

     0   :  { %8 = vsyncpa [#allocation3], 0  ;;  %s1273_s12 = smov [#allocation2]   ;;  %s1420_s0 = inlined_call_operand.vmem [shape: f32[8,128], index: 0, kind: input, shape index: {}]   ;;  %s1421_s1 = inlined_call_operand.hbm [shape: f32[6,128,128], index: 1, kind: input, shape index: {}]   ;;  %s1422_s2 = inlined_call_operand.vmem [shape: f32[11,128], index: 2, kind: input, shape index: {}]   ;;  %s1423_s3 = inlined_call_operand.vmem [shape: f32[8,128], index: 3, kind: output, shape index: {}]  }
   0x1   :  { %s16_s13 = sshll.u32 %s1273_s12, 4  ;;  %s1249_s16 = scalar_lea.hbm %s1421_s1, 12288  ;;  %s17_s13 = int_to_ptr.vmem [resolvable:$true] %s16_s13 }
   0x2   :  { %p1250_p0 = scmp.ne.s32.totalorder %s1421_s1, %s1249_s16  ;;  %p1253_p1 = scmp.lt.u32.totalorder %s1249_s16, %s1421_s1 }
   0x4   :  { %p1255_p2 = pnand %p1253_p1, %p1250_p0 }
   0x6   :  { %1258 = shalt.err (!%p1255_p2)
}
   0x7   :  { %s1259_s21 = scalar_lea.vmem %s17_s13, 12288  ;;  %p1264_p4 = scmp.lt.s32.totalorder %s17_s13, %s17_s13 }
   0x8   :  { %p1260_p3 = scmp.ne.s32.totalorder %s17_s13, %s1259_s21  ;;  %p1265_p5 = scmp.lt.s32.totalorder %s1259_s21, %s1259_s21 }
   0xa   :  { %p1266_p6 = por %p1265_p5, %p1264_p4 }
   0xc   :  { %p1267_p7 = pnand %p1266_p6, %p1260_p3 }
   0xe   :  { %1270 = shalt.err (!%p1267_p7)
}
   0xf   :  { %s1274_s22 = smov 128   ;;  %s1275_s23 = smov 8  }
  0x10   :  { %22 = dma.hbm_to_vmem [thread:$0]  %s1421_s1, 12288, %s17_s13, [#allocation3], %s1274_s22, %s1274_s22, %s1275_s23  }
  0x11   :  { %1271 = dma.done.wait [#allocation3], 12288  }
  0x12   :  { %1272 = vsyncadd [#allocation3], 4294955008  ;;  %v1276_v0 = vmov 0.0|0.0   ;;  %vm1277_vm0 = vmmov 0   ;;  %v1278_v1 = vmov 0.0   ;;  %v31_v2 = vld [vmem:[#allocation2] sm:$0xff] }
  0x13   :  { %1079 = vmatprep.subr.bf16.mxu0 %v1276_v0  ;;  %901 = vmatprep.mubr.msk.f32.mxu0 %vm1277_vm0, %v1278_v1  ;;  %v32_v3 = vld [vmem:[#allocation2 + $0x8] sm:$0xff]  ;;  %v33_v4 = vld [vmem:[#allocation2 + $0x10] sm:$0xff]  ;;  %v34_v6 = vld [vmem:[#allocation2 + $0x18] sm:$0xff] }
  0x14   :  { %1103 = vmatprep.subr.bf16.mxu1 %v1276_v0  ;;  %936 = vmatprep.mubr.msk.f32.mxu1 %vm1277_vm0, %v1278_v1  ;;  %v1080_v5 = vpack.c.bf16 %v32_v3, %v31_v2  ;;  %v1083_v7 = vpack.c.bf16 %v34_v6, %v33_v4  ;;  %v35_v8 = vld [vmem:[#allocation2 + $0x20] sm:$0xff]  ;;  %v36_v9 = vld [vmem:[#allocation2 + $0x28] sm:$0xff]  ;;  %v37_v11 = vld [vmem:[#allocation2 + $0x30] sm:$0xff] }
  0x15   :  { %v1086_v10 = vpack.c.bf16 %v36_v9, %v35_v8  ;;  %v38_v12 = vld [vmem:[#allocation2 + $0x38] sm:$0xff]  ;;  %v39_v14 = vld [vmem:[#allocation2 + $0x40] sm:$0xff]  ;;  %v40_v15 = vld [vmem:[#allocation2 + $0x48] sm:$0xff] }
  0x16   :  { %1081 = vmatpush3.bf16.msra.mxu0 %v1080_v5  ;;  %v1089_v13 = vpack.c.bf16 %v38_v12, %v37_v11  ;;  %v1092_v16 = vpack.c.bf16 %v40_v15, %v39_v14  ;;  %v41_v17 = vld [vmem:[#allocation2 + $0x50] sm:$0xff]  ;;  %v42_v18 = vld [vmem:[#allocation2 + $0x58] sm:$0xff]  ;;  %v43_v20 = vld [vmem:[#allocation2 + $0x60] sm:$0xff] }
  0x17   :  { %1082 = vmatprep.subr.bf16.mxu0 %v1276_v0  ;;  %v1095_v19 = vpack.c.bf16 %v42_v18, %v41_v17  ;;  %v44_v21 = vld [vmem:[#allocation2 + $0x68] sm:$0xff]  ;;  %v45_v23 = vld [vmem:[#allocation2 + $0x70] sm:$0xff]  ;;  %v46_v24 = vld [vmem:[#allocation2 + $0x78] sm:$0xff] }
  0x18   :  { %v1098_v22 = vpack.c.bf16 %v44_v21, %v43_v20  ;;  %v1101_v25 = vpack.c.bf16 %v46_v24, %v45_v23  ;;  %v30_v26 = vld [vmem:[%s1420_s0] sm:$0xff]  ;;  %v160_v28 = vld [vmem:[#allocation2 + $0x88] sm:$0xff]  ;;  %v161_v30 = vld [vmem:[#allocation2 + $0x90] sm:$0xff] }
  0x19   :  { %v159_v27 = vld [vmem:[#allocation2 + $0x80] sm:$0xff]  ;;  %v162_v31 = vld [vmem:[#allocation2 + $0x98] sm:$0xff]  ;;  %v164_v34 = vld [vmem:[#allocation2 + $0xa8] sm:$0xff] }
  0x1a   :  { %1084 = vmatpush3.bf16.msra.mxu0 %v1083_v7  ;;  %v1104_v29 = vpack.c.bf16 %v160_v28, %v159_v27  ;;  %v1107_v32 = vpack.c.bf16 %v162_v31, %v161_v30  ;;  %v163_v33 = vld [vmem:[#allocation2 + $0xa0] sm:$0xff]  ;;  %v165_v36 = vld [vmem:[#allocation2 + $0xb0] sm:$0xff]  ;;  %v166_v37 = vld [vmem:[#allocation2 + $0xb8] sm:$0xff] }
  0x1b   :  { %1085 = vmatprep.subr.bf16.mxu0 %v1276_v0  ;;  %v1110_v35 = vpack.c.bf16 %v164_v34, %v163_v33  ;;  %v1113_v38 = vpack.c.bf16 %v166_v37, %v165_v36  ;;  %v167_v39 = vld [vmem:[#allocation2 + $0xc0] sm:$0xff]  ;;  %v168_v40 = vld [vmem:[#allocation2 + $0xc8] sm:$0xff]  ;;  %v169_v42 = vld [vmem:[#allocation2 + $0xd0] sm:$0xff] }
  0x1c   :  { %1105 = vmatpush3.bf16.msra.mxu1 %v1104_v29  ;;  %v1116_v41 = vpack.c.bf16 %v168_v40, %v167_v39  ;;  %v170_v43 = vld [vmem:[#allocation2 + $0xd8] sm:$0xff]  ;;  %v171_v45 = vld [vmem:[#allocation2 + $0xe0] sm:$0xff]  ;;  %v172_v46 = vld [vmem:[#allocation2 + $0xe8] sm:$0xff] }
  0x1d   :  { %1106 = vmatprep.subr.bf16.mxu1 %v1276_v0  ;;  %v1119_v44 = vpack.c.bf16 %v170_v43, %v169_v42  ;;  %v1122_v47 = vpack.c.bf16 %v172_v46, %v171_v45  ;;  %v173_v48 = vld [vmem:[#allocation2 + $0xf0] sm:$0xff]  ;;  %v174_v49 = vld [vmem:[#allocation2 + $0xf8] sm:$0xff]  ;;  %v1343_v12 = vld [vmem:[%s1422_s2] sm:$0xff] }
  0x1e   :  { %1087 = vmatpush3.bf16.msra.mxu0 %v1086_v10  ;;  %v1125_v50 = vpack.c.bf16 %v174_v49, %v173_v48  ;;  %v143_v10 = vlaneseq  ;;  %v287_v29 = vld [vmem:[#allocation2 + $0x100] sm:$0xff]  ;;  %v288_v30 = vld [vmem:[#allocation2 + $0x108] sm:$0xff]  ;;  %v290_v33 = vld [vmem:[#allocation2 + $0x118] sm:$0xff] }
  0x1f   :  { %1088 = vmatprep.subr.bf16.mxu0 %v1276_v0  ;;  %v1128_v31 = vpack.c.bf16 %v288_v30, %v287_v29  ;;  %v292_v36 = vld [vmem:[#allocation2 + $0x128] sm:$0xff]  ;;  %v294_v39 = vld [vmem:[#allocation2 + $0x138] sm:$0xff] }
  0x20   :  { %1108 = vmatpush3.bf16.msra.mxu1 %v1107_v32  ;;  %v1338_v11 = vshrl.u32 %v143_v10, 7  ;;  %v289_v32 = vld [vmem:[#allocation2 + $0x110] sm:$0xff]  ;;  %v296_v42 = vld [vmem:[#allocation2 + $0x148] sm:$0xff]  ;;  %v298_v45 = vld [vmem:[#allocation2 + $0x158] sm:$0xff] }
  0x21   :  { %1109 = vmatprep.subr.bf16.mxu1 %v1276_v0  ;;  %v1131_v34 = vpack.c.bf16 %v290_v33, %v289_v32  ;;  %v300_v48 = vld [vmem:[#allocation2 + $0x168] sm:$0xff] }
  0x22   :  { %1090 = vmatpush3.bf16.msra.mxu0 %v1089_v13  ;;  %v145_v15 = vsub.s32 0, %v1338_v11  ;;  %v416_v32 = vld [vmem:[#allocation2 + $0x188] sm:$0xff] }
  0x23   :  { %1091 = vmatprep.subr.bf16.mxu0 %v1276_v0 }
  0x24   :  { %1111 = vmatpush3.bf16.msra.mxu1 %v1110_v35  ;;  %v291_v35 = vld [vmem:[#allocation2 + $0x120] sm:$0xff] }
  0x25   :  { %1112 = vmatprep.subr.bf16.mxu1 %v1276_v0  ;;  %v1134_v37 = vpack.c.bf16 %v292_v36, %v291_v35  ;;  %v418_v35 = vld [vmem:[#allocation2 + $0x198] sm:$0xff] }
  0x26   :  { %1093 = vmatpush3.bf16.msra.mxu0 %v1092_v16 }
  0x27   :  { %1094 = vmatprep.subr.bf16.mxu0 %v1276_v0 }
  0x28   :  { %1114 = vmatpush3.bf16.msra.mxu1 %v1113_v38  ;;  %v293_v38 = vld [vmem:[#allocation2 + $0x130] sm:$0xff] }
  0x29   :  { %1115 = vmatprep.subr.bf16.mxu1 %v1276_v0  ;;  %v1137_v40 = vpack.c.bf16 %v294_v39, %v293_v38  ;;  %v420_v38 = vld [vmem:[#allocation2 + $0x1a8] sm:$0xff] }
  0x2a   :  { %1096 = vmatpush3.bf16.msra.mxu0 %v1095_v19  ;;  %v150_v19 = vsub.s32 5, %v1338_v11 }
  0x2b   :  { %1097 = vmatprep.subr.bf16.mxu0 %v1276_v0 }
  0x2c   :  { %1117 = vmatpush3.bf16.msra.mxu1 %v1116_v41  ;;  %v295_v41 = vld [vmem:[#allocation2 + $0x140] sm:$0xff] }
  0x2d   :  { %1118 = vmatprep.subr.bf16.mxu1 %v1276_v0  ;;  %v1140_v43 = vpack.c.bf16 %v296_v42, %v295_v41  ;;  %v422_v41 = vld [vmem:[#allocation2 + $0x1b8] sm:$0xff] }
  0x2e   :  { %1099 = vmatpush3.bf16.msra.mxu0 %v1098_v22 }
  0x2f   :  { %1100 = vmatprep.subr.bf16.mxu0 %v1276_v0 }
  0x30   :  { %1120 = vmatpush3.bf16.msra.mxu1 %v1119_v44  ;;  %v297_v44 = vld [vmem:[#allocation2 + $0x150] sm:$0xff] }
  0x31   :  { %1121 = vmatprep.subr.bf16.mxu1 %v1276_v0  ;;  %v1143_v46 = vpack.c.bf16 %v298_v45, %v297_v44  ;;  %v424_v44 = vld [vmem:[#allocation2 + $0x1c8] sm:$0xff] }
  0x32   :  { %1102 = vmatpush3.bf16.msra.mxu0 %v1101_v25 }
  0x33   :  { %1127 = vmatprep.subr.bf16.mxu0 %v1276_v0 }
  0x34   :  { %1123 = vmatpush3.bf16.msra.mxu1 %v1122_v47  ;;  %v299_v47 = vld [vmem:[#allocation2 + $0x160] sm:$0xff] }
  0x35   :  { %902 = vmatmul.mubr.f32.vlgmr.msra.gmra.mrb[0].mxu0 %v30_v26  ;;  %1124 = vmatprep.subr.bf16.mxu1 %v1276_v0  ;;  %v1146_v49 = vpack.c.bf16 %v300_v48, %v299_v47  ;;  %v426_v47 = vld [vmem:[#allocation2 + $0x1d8] sm:$0xff] }
  0x36   :  { %971 = vmatprep.mubr.msk.f32.mxu0 %vm1277_vm0, %v1278_v1  ;;  %1129 = vmatpush3.bf16.msra.mxu0 %v1128_v31  ;;  %v415_v31 = vld [vmem:[#allocation2 + $0x180] sm:$0xff] }
  0x37   :  { %1130 = vmatprep.subr.bf16.mxu0 %v1276_v0  ;;  %v1152_v33 = vpack.c.bf16 %v416_v32, %v415_v31 }
  0x38   :  { %1126 = vmatpush3.bf16.msra.mxu1 %v1125_v50  ;;  %v301_v50 = vld [vmem:[#allocation2 + $0x170] sm:$0xff] }
  0x39   :  { %1151 = vmatprep.subr.bf16.mxu1 %v1276_v0 }
  0x3a   :  { %1132 = vmatpush3.bf16.msra.mxu0 %v1131_v34  ;;  %v417_v34 = vld [vmem:[#allocation2 + $0x190] sm:$0xff] }
  0x3b   :  { %1133 = vmatprep.subr.bf16.mxu0 %v1276_v0  ;;  %v1155_v36 = vpack.c.bf16 %v418_v35, %v417_v34  ;;  %v543_v34 = vld [vmem:[#allocation2 + $0x200] sm:$0xff]  ;;  %v544_v35 = vld [vmem:[#allocation2 + $0x208] sm:$0xff] }
  0x3e   :  { %1135 = vmatpush3.bf16.msra.mxu0 %v1134_v37  ;;  %v419_v37 = vld [vmem:[#allocation2 + $0x1a0] sm:$0xff] }
  0x3f   :  { %1136 = vmatprep.subr.bf16.mxu0 %v1276_v0  ;;  %v1158_v39 = vpack.c.bf16 %v420_v38, %v419_v37  ;;  %v545_v37 = vld [vmem:[#allocation2 + $0x210] sm:$0xff]  ;;  %v546_v38 = vld [vmem:[#allocation2 + $0x218] sm:$0xff] }
  0x42   :  { %1138 = vmatpush3.bf16.msra.mxu0 %v1137_v40  ;;  %v421_v40 = vld [vmem:[#allocation2 + $0x1b0] sm:$0xff] }
  0x43   :  { %1139 = vmatprep.subr.bf16.mxu0 %v1276_v0  ;;  %v1161_v42 = vpack.c.bf16 %v422_v41, %v421_v40  ;;  %v547_v40 = vld [vmem:[#allocation2 + $0x220] sm:$0xff]  ;;  %v548_v41 = vld [vmem:[#allocation2 + $0x228] sm:$0xff] }
  0x46   :  { %1141 = vmatpush3.bf16.msra.mxu0 %v1140_v43  ;;  %v423_v43 = vld [vmem:[#allocation2 + $0x1c0] sm:$0xff] }
  0x47   :  { %1142 = vmatprep.subr.bf16.mxu0 %v1276_v0  ;;  %v1164_v45 = vpack.c.bf16 %v424_v44, %v423_v43  ;;  %v549_v43 = vld [vmem:[#allocation2 + $0x230] sm:$0xff] }
  0x4a   :  { %1144 = vmatpush3.bf16.msra.mxu0 %v1143_v46  ;;  %v425_v46 = vld [vmem:[#allocation2 + $0x1d0] sm:$0xff] }
  0x4b   :  { %1145 = vmatprep.subr.bf16.mxu0 %v1276_v0  ;;  %v1167_v48 = vpack.c.bf16 %v426_v47, %v425_v46  ;;  %v552_v46 = vld [vmem:[#allocation2 + $0x248] sm:$0xff] }
  0x4e   :  { %1147 = vmatpush3.bf16.msra.mxu0 %v1146_v49  ;;  %v427_v49 = vld [vmem:[#allocation2 + $0x1e0] sm:$0xff] }
  0x4f   :  { %1148 = vmatprep.subr.bf16.mxu0 %v1276_v0 }
 0x108   :  { %v113_v51 = vpop.f32.mrb[0].mxu0 }
 0x109   :  { %v117_v52 = vrot.slane %v113_v51, 4  ;;  %v124_v53 = vmul.f32 %v113_v51, %v113_v51  ;;  %v903_v54 = vpop.f32.mrb[1].mxu0 }
 0x10b   :  { %v118_v55 = vadd.f32 %v117_v52, %v113_v51  ;;  %v125_v56 = vrot.slane %v124_v53, 4 }
 0x10d   :  { %v119_v57 = vrot.slane %v118_v55, 2  ;;  %v126_v58 = vadd.f32 %v125_v56, %v124_v53 }
 0x10f   :  { %v120_v59 = vadd.f32 %v119_v57, %v118_v55  ;;  %v127_v60 = vrot.slane %v126_v58, 2 }
 0x111   :  { %v121_v61 = vrot.slane %v120_v59, 1  ;;  %v128_v62 = vadd.f32 %v127_v60, %v126_v58 }
 0x113   :  { %v122_v63 = vadd.f32 %v121_v61, %v120_v59  ;;  %v129_v2 = vrot.slane %v128_v62, 1 }
 0x115   :  { %v123_v3 = vmul.f32 0.125, %v122_v63  ;;  %v130_v4 = vadd.f32 %v129_v2, %v128_v62 }
 0x117   :  { %v131_v5 = vmul.f32 0.125, %v130_v4  ;;  %v132_v6 = vmul.f32 %v123_v3, %v123_v3 }
 0x119   :  { %v133_v7 = vsub.f32 %v131_v5, %v132_v6 }
 0x11b   :  { %v134_v8 = vmax.f32 %v133_v7, 0.0 }
 0x11d   :  { %v135_v9 = vadd.f32 1e-05, %v134_v8 }
 0x11f   :  { %1229 = vrsqrt.f32 %v135_v9 }
 0x129   :  { %v1230_v13 = vpop.eup %1229 }
 0x12a   :  { %v137_v14 = vmul.f32 %v1230_v13, %v1343_v12 }
 0x12c   :  { %v138_v16 = vmul.f32 %v137_v14, %v123_v3  ;;  %v146_v18 = vrot.slane %v137_v14, %v145_v15 }
 0x12e   :  { %v140_v17 = vrot.slane %v138_v16, 3  ;;  %v147_v21 = vmul.f32 %v146_v18, %v113_v51  ;;  %v302_v51 = vld [vmem:[#allocation2 + $0x178] sm:$0xff] }
 0x12f   :  { %v1149_v52 = vpack.c.bf16 %v302_v51, %v301_v50  ;;  %v428_v50 = vld [vmem:[#allocation2 + $0x1e8] sm:$0xff] }
 0x130   :  { %v142_v20 = vsub.f32 %v1343_v12, %v140_v17  ;;  %v273_v17 = vsub.s32 1, %v1338_v11  ;;  %v1170_v51 = vpack.c.bf16 %v428_v50, %v427_v49  ;;  %v554_v49 = vld [vmem:[#allocation2 + $0x258] sm:$0xff] }
 0x131   :  { %1150 = vmatpush3.bf16.msra.mxu0 %v1149_v52  ;;  %v429_v52 = vld [vmem:[#allocation2 + $0x1f0] sm:$0xff] }
 0x132   :  { %v151_v22 = vrot.slane %v142_v20, %v150_v19  ;;  %1175 = vmatprep.subr.bf16.mxu0 %v1276_v0 }
 0x134   :  { %v152_v23 = vadd.f32 %v151_v22, %v147_v21  ;;  %v278_v21 = vsub.s32 6, %v1338_v11 }
 0x136   :  { %v154_v24 = vmul.f32 0.70710677, %v152_v23  ;;  %v153_v26 = vmul.f32 0.5, %v152_v23 }
 0x138   :  { %1231 = verf.f32 %v154_v24 }
 0x142   :  { %v1232_v25 = vpop.eup %1231 }
 0x143   :  { %v156_v27 = vadd.f32 1.0, %v1232_v25 }
 0x145   :  { %v157_v28 = vmul.f32 %v156_v27, %v153_v26 }
 0x147   :  { %937 = vmatmul.mubr.f32.vlgmr.msra.gmra.mrb[0].mxu1 %v157_v28 }
 0x148   :  { %1006 = vmatprep.mubr.msk.f32.mxu1 %vm1277_vm0, %v1278_v1  ;;  %1153 = vmatpush3.bf16.msra.mxu1 %v1152_v33 }
 0x149   :  { %1154 = vmatprep.subr.bf16.mxu1 %v1276_v0 }
 0x14c   :  { %1156 = vmatpush3.bf16.msra.mxu1 %v1155_v36  ;;  %v1176_v36 = vpack.c.bf16 %v544_v35, %v543_v34 }
 0x14d   :  { %1157 = vmatprep.subr.bf16.mxu1 %v1276_v0 }
 0x150   :  { %1159 = vmatpush3.bf16.msra.mxu1 %v1158_v39  ;;  %v1179_v39 = vpack.c.bf16 %v546_v38, %v545_v37  ;;  %v671_v37 = vld [vmem:[#allocation2 + $0x280] sm:$0xff]  ;;  %v672_v38 = vld [vmem:[#allocation2 + $0x288] sm:$0xff] }
 0x151   :  { %1160 = vmatprep.subr.bf16.mxu1 %v1276_v0 }
 0x154   :  { %1162 = vmatpush3.bf16.msra.mxu1 %v1161_v42  ;;  %v1182_v42 = vpack.c.bf16 %v548_v41, %v547_v40  ;;  %v673_v40 = vld [vmem:[#allocation2 + $0x290] sm:$0xff]  ;;  %v674_v41 = vld [vmem:[#allocation2 + $0x298] sm:$0xff] }
 0x155   :  { %1163 = vmatprep.subr.bf16.mxu1 %v1276_v0 }
 0x158   :  { %1165 = vmatpush3.bf16.msra.mxu1 %v1164_v45  ;;  %v551_v45 = vld [vmem:[#allocation2 + $0x240] sm:$0xff] }
 0x159   :  { %1166 = vmatprep.subr.bf16.mxu1 %v1276_v0  ;;  %v1188_v47 = vpack.c.bf16 %v552_v46, %v551_v45  ;;  %v678_v45 = vld [vmem:[#allocation2 + $0x2b8] sm:$0xff] }
 0x15c   :  { %1168 = vmatpush3.bf16.msra.mxu1 %v1167_v48  ;;  %v553_v48 = vld [vmem:[#allocation2 + $0x250] sm:$0xff] }
 0x15d   :  { %1169 = vmatprep.subr.bf16.mxu1 %v1276_v0  ;;  %v1191_v50 = vpack.c.bf16 %v554_v49, %v553_v48  ;;  %v680_v48 = vld [vmem:[#allocation2 + $0x2c8] sm:$0xff] }
 0x160   :  { %1171 = vmatpush3.bf16.msra.mxu1 %v1170_v51  ;;  %v555_v51 = vld [vmem:[#allocation2 + $0x260] sm:$0xff] }
 0x161   :  { %1172 = vmatprep.subr.bf16.mxu1 %v1276_v0 }
 0x21a   :  { %v241_v53 = vpop.f32.mrb[0].mxu1 }
 0x21b   :  { %v245_v54 = vrot.slane %v241_v53, 4  ;;  %v252_v55 = vmul.f32 %v241_v53, %v241_v53  ;;  %v938_v56 = vpop.f32.mrb[1].mxu1 }
 0x21d   :  { %v246_v57 = vadd.f32 %v245_v54, %v241_v53  ;;  %v253_v58 = vrot.slane %v252_v55, 4 }
 0x21f   :  { %v247_v59 = vrot.slane %v246_v57, 2  ;;  %v254_v60 = vadd.f32 %v253_v58, %v252_v55 }
 0x221   :  { %v248_v61 = vadd.f32 %v247_v59, %v246_v57  ;;  %v255_v62 = vrot.slane %v254_v60, 2 }
 0x223   :  { %v249_v63 = vrot.slane %v248_v61, 1  ;;  %v256_v2 = vadd.f32 %v255_v62, %v254_v60 }
 0x225   :  { %v250_v3 = vadd.f32 %v249_v63, %v248_v61  ;;  %v257_v4 = vrot.slane %v256_v2, 1 }
 0x227   :  { %v251_v5 = vmul.f32 0.125, %v250_v3  ;;  %v258_v6 = vadd.f32 %v257_v4, %v256_v2 }
 0x229   :  { %v259_v7 = vmul.f32 0.125, %v258_v6  ;;  %v260_v8 = vmul.f32 %v251_v5, %v251_v5 }
 0x22b   :  { %v261_v9 = vsub.f32 %v259_v7, %v260_v8 }
 0x22d   :  { %v262_v10 = vmax.f32 %v261_v9, 0.0 }
 0x22f   :  { %v263_v13 = vadd.f32 1e-05, %v262_v10 }
 0x231   :  { %1233 = vrsqrt.f32 %v263_v13 }
 0x23b   :  { %v1234_v14 = vpop.eup %1233 }
 0x23c   :  { %v265_v16 = vmul.f32 %v1234_v14, %v1343_v12 }
 0x23e   :  { %v266_v18 = vmul.f32 %v265_v16, %v251_v5  ;;  %v274_v20 = vrot.slane %v265_v16, %v273_v17 }
 0x240   :  { %v268_v19 = vrot.slane %v266_v18, 3  ;;  %v275_v23 = vmul.f32 %v274_v20, %v241_v53  ;;  %v430_v53 = vld [vmem:[#allocation2 + $0x1f8] sm:$0xff]  ;;  %v401_v20 = vsub.s32 2, %v1338_v11 }
 0x241   :  { %v1173_v54 = vpack.c.bf16 %v430_v53, %v429_v52  ;;  %v556_v52 = vld [vmem:[#allocation2 + $0x268] sm:$0xff] }
 0x242   :  { %v270_v22 = vsub.f32 %v1343_v12, %v268_v19  ;;  %v1194_v53 = vpack.c.bf16 %v556_v52, %v555_v51  ;;  %v682_v51 = vld [vmem:[#allocation2 + $0x2d8] sm:$0xff] }
 0x243   :  { %1174 = vmatpush3.bf16.msra.mxu1 %v1173_v54  ;;  %v557_v54 = vld [vmem:[#allocation2 + $0x270] sm:$0xff] }
 0x244   :  { %v279_v24 = vrot.slane %v270_v22, %v278_v21  ;;  %1199 = vmatprep.subr.bf16.mxu1 %v1276_v0 }
 0x246   :  { %v280_v25 = vadd.f32 %v279_v24, %v275_v23  ;;  %v406_v24 = vsub.s32 7, %v1338_v11 }
 0x248   :  { %v282_v26 = vmul.f32 0.70710677, %v280_v25  ;;  %v281_v28 = vmul.f32 0.5, %v280_v25 }
 0x24a   :  { %1235 = verf.f32 %v282_v26 }
 0x254   :  { %v1236_v27 = vpop.eup %1235 }
 0x255   :  { %v284_v29 = vadd.f32 1.0, %v1236_v27 }
 0x257   :  { %v285_v30 = vmul.f32 %v284_v29, %v281_v28 }
 0x259   :  { %972 = vmatmul.mubr.f32.vlgmr.msra.gmra.mrb[2].mxu0 %v285_v30 }
 0x25a   :  { %1041 = vmatprep.mubr.msk.f32.mxu0 %vm1277_vm0, %v1278_v1  ;;  %1177 = vmatpush3.bf16.msra.mxu0 %v1176_v36 }
 0x25b   :  { %1178 = vmatprep.subr.bf16.mxu0 %v1276_v0 }
 0x25e   :  { %1180 = vmatpush3.bf16.msra.mxu0 %v1179_v39  ;;  %v1200_v39 = vpack.c.bf16 %v672_v38, %v671_v37 }
 0x25f   :  { %1181 = vmatprep.subr.bf16.mxu0 %v1276_v0 }
 0x262   :  { %1183 = vmatpush3.bf16.msra.mxu0 %v1182_v42  ;;  %v1203_v42 = vpack.c.bf16 %v674_v41, %v673_v40 }
 0x263   :  { %1184 = vmatprep.subr.bf16.mxu0 %v1276_v0 }
 0x32c   :  { %v369_v55 = vpop.f32.mrb[2].mxu0 }
 0x32d   :  { %v373_v56 = vrot.slane %v369_v55, 4  ;;  %v380_v57 = vmul.f32 %v369_v55, %v369_v55  ;;  %v973_v58 = vpop.f32.mrb[3].mxu0 }
 0x32f   :  { %v374_v59 = vadd.f32 %v373_v56, %v369_v55  ;;  %v381_v60 = vrot.slane %v380_v57, 4 }
 0x331   :  { %v375_v61 = vrot.slane %v374_v59, 2  ;;  %v382_v62 = vadd.f32 %v381_v60, %v380_v57 }
 0x333   :  { %v376_v63 = vadd.f32 %v375_v61, %v374_v59  ;;  %v383_v2 = vrot.slane %v382_v62, 2 }
 0x335   :  { %v377_v3 = vrot.slane %v376_v63, 1  ;;  %v384_v4 = vadd.f32 %v383_v2, %v382_v62 }
 0x337   :  { %v378_v5 = vadd.f32 %v377_v3, %v376_v63  ;;  %v385_v6 = vrot.slane %v384_v4, 1 }
 0x339   :  { %v379_v7 = vmul.f32 0.125, %v378_v5  ;;  %v386_v8 = vadd.f32 %v385_v6, %v384_v4 }
 0x33b   :  { %v387_v9 = vmul.f32 0.125, %v386_v8  ;;  %v388_v10 = vmul.f32 %v379_v7, %v379_v7 }
 0x33d   :  { %v389_v13 = vsub.f32 %v387_v9, %v388_v10 }
 0x33f   :  { %v390_v14 = vmax.f32 %v389_v13, 0.0 }
 0x341   :  { %v391_v16 = vadd.f32 1e-05, %v390_v14 }
 0x343   :  { %1237 = vrsqrt.f32 %v391_v16 }
 0x34d   :  { %v1238_v18 = vpop.eup %1237 }
 0x34e   :  { %v393_v19 = vmul.f32 %v1238_v18, %v1343_v12 }
 0x350   :  { %v394_v21 = vmul.f32 %v393_v19, %v379_v7  ;;  %v402_v23 = vrot.slane %v393_v19, %v401_v20 }
 0x352   :  { %v396_v22 = vrot.slane %v394_v21, 3  ;;  %v403_v26 = vmul.f32 %v402_v23, %v369_v55  ;;  %v558_v55 = vld [vmem:[#allocation2 + $0x278] sm:$0xff]  ;;  %v529_v23 = vsub.s32 3, %v1338_v11 }
 0x353   :  { %v1197_v56 = vpack.c.bf16 %v558_v55, %v557_v54  ;;  %v684_v54 = vld [vmem:[#allocation2 + $0x2e8] sm:$0xff] }
 0x354   :  { %v398_v25 = vsub.f32 %v1343_v12, %v396_v22 }
 0x356   :  { %v407_v27 = vrot.slane %v398_v25, %v406_v24  ;;  %v1397_v25 = vld [vmem:[%s1422_s2 + $0x8] sm:$0x7] }
 0x358   :  { %v408_v28 = vadd.f32 %v407_v27, %v403_v26 }
 0x35a   :  { %v410_v29 = vmul.f32 0.70710677, %v408_v28  ;;  %v409_v31 = vmul.f32 0.5, %v408_v28 }
 0x35c   :  { %1239 = verf.f32 %v410_v29 }
 0x366   :  { %v1240_v30 = vpop.eup %1239 }
 0x367   :  { %v412_v32 = vadd.f32 1.0, %v1240_v30 }
 0x369   :  { %v413_v33 = vmul.f32 %v412_v32, %v409_v31 }
 0x36b   :  { %1007 = vmatmul.mubr.f32.vlgmr.msra.gmra.mrb[2].mxu1 %v413_v33 }
 0x36c   :  { %1076 = vmatprep.mubr.msk.f32.mxu1 %vm1277_vm0, %v1278_v1  ;;  %v550_v1 = vld [vmem:[#allocation2 + $0x238] sm:$0xff]  ;;  %1201 = vmatpush3.bf16.msra.mxu1 %v1200_v39 }
 0x36d   :  { %v1185_v44 = vpack.c.bf16 %v550_v1, %v549_v43  ;;  %1202 = vmatprep.subr.bf16.mxu1 %v1276_v0  ;;  %v676_v43 = vld [vmem:[#allocation2 + $0x2a8] sm:$0xff] }
 0x36f   :  { %1186 = vmatpush3.bf16.msra.mxu0 %v1185_v44  ;;  %v677_v44 = vld [vmem:[#allocation2 + $0x2b0] sm:$0xff] }
 0x370   :  { %1187 = vmatprep.subr.bf16.mxu0 %v1276_v0  ;;  %1204 = vmatpush3.bf16.msra.mxu1 %v1203_v42  ;;  %v1209_v46 = vpack.c.bf16 %v678_v45, %v677_v44 }
 0x371   :  { %1205 = vmatprep.subr.bf16.mxu1 %v1276_v0 }
 0x373   :  { %1189 = vmatpush3.bf16.msra.mxu0 %v1188_v47  ;;  %v679_v47 = vld [vmem:[#allocation2 + $0x2c0] sm:$0xff] }
 0x374   :  { %1190 = vmatprep.subr.bf16.mxu0 %v1276_v0  ;;  %v1212_v49 = vpack.c.bf16 %v680_v48, %v679_v47 }
 0x377   :  { %1192 = vmatpush3.bf16.msra.mxu0 %v1191_v50  ;;  %v681_v50 = vld [vmem:[#allocation2 + $0x2d0] sm:$0xff] }
 0x378   :  { %1193 = vmatprep.subr.bf16.mxu0 %v1276_v0  ;;  %v1215_v52 = vpack.c.bf16 %v682_v51, %v681_v50 }
 0x37b   :  { %1195 = vmatpush3.bf16.msra.mxu0 %v1194_v53  ;;  %v683_v53 = vld [vmem:[#allocation2 + $0x2e0] sm:$0xff] }
 0x37c   :  { %1196 = vmatprep.subr.bf16.mxu0 %v1276_v0  ;;  %v1218_v55 = vpack.c.bf16 %v684_v54, %v683_v53 }
 0x37f   :  { %1198 = vmatpush3.bf16.msra.mxu0 %v1197_v56  ;;  %v685_v56 = vld [vmem:[#allocation2 + $0x2f0] sm:$0xff] }
 0x43e   :  { %v497_v57 = vpop.f32.mrb[2].mxu1 }
 0x43f   :  { %v501_v58 = vrot.slane %v497_v57, 4  ;;  %v508_v59 = vmul.f32 %v497_v57, %v497_v57  ;;  %v1008_v60 = vpop.f32.mrb[3].mxu1 }
 0x441   :  { %v502_v61 = vadd.f32 %v501_v58, %v497_v57  ;;  %v509_v62 = vrot.slane %v508_v59, 4 }
 0x443   :  { %v503_v63 = vrot.slane %v502_v61, 2  ;;  %v510_v2 = vadd.f32 %v509_v62, %v508_v59 }
 0x445   :  { %v504_v3 = vadd.f32 %v503_v63, %v502_v61  ;;  %v511_v4 = vrot.slane %v510_v2, 2 }
 0x447   :  { %v505_v5 = vrot.slane %v504_v3, 1  ;;  %v512_v6 = vadd.f32 %v511_v4, %v510_v2 }
 0x449   :  { %v506_v7 = vadd.f32 %v505_v5, %v504_v3  ;;  %v513_v8 = vrot.slane %v512_v6, 1 }
 0x44b   :  { %v507_v9 = vmul.f32 0.125, %v506_v7  ;;  %v514_v10 = vadd.f32 %v513_v8, %v512_v6 }
 0x44d   :  { %v515_v13 = vmul.f32 0.125, %v514_v10  ;;  %v516_v14 = vmul.f32 %v507_v9, %v507_v9 }
 0x44f   :  { %v517_v16 = vsub.f32 %v515_v13, %v516_v14 }
 0x451   :  { %v518_v18 = vmax.f32 %v517_v16, 0.0 }
 0x453   :  { %v519_v19 = vadd.f32 1e-05, %v518_v18 }
 0x455   :  { %1241 = vrsqrt.f32 %v519_v19 }
 0x45f   :  { %v1242_v21 = vpop.eup %1241 }
 0x460   :  { %v521_v22 = vmul.f32 %v1242_v21, %v1343_v12 }
 0x462   :  { %v522_v24 = vmul.f32 %v521_v22, %v507_v9  ;;  %v530_v27 = vrot.slane %v521_v22, %v529_v23 }
 0x464   :  { %v524_v26 = vrot.slane %v522_v24, 3  ;;  %v531_v29 = vmul.f32 %v530_v27, %v497_v57  ;;  %v686_v57 = vld [vmem:[#allocation2 + $0x2f8] sm:$0xff]  ;;  %v657_v24 = vsub.s32 4, %v1338_v11 }
 0x465   :  { %v1221_v58 = vpack.c.bf16 %v686_v57, %v685_v56 }
 0x466   :  { %v526_v28 = vsub.f32 %v1397_v25, %v524_v26 }
 0x468   :  { %v535_v30 = vrot.slane %v526_v28, %v145_v15  ;;  %v675_v15 = vld [vmem:[#allocation2 + $0x2a0] sm:$0xff] }
 0x469   :  { %v1206_v1 = vpack.c.bf16 %v676_v43, %v675_v15 }
 0x46a   :  { %v536_v31 = vadd.f32 %v535_v30, %v531_v29 }
 0x46b   :  { %1207 = vmatpush3.bf16.msra.mxu1 %v1206_v1 }
 0x46c   :  { %v538_v32 = vmul.f32 0.70710677, %v536_v31  ;;  %v537_v34 = vmul.f32 0.5, %v536_v31  ;;  %1208 = vmatprep.subr.bf16.mxu1 %v1276_v0 }
 0x46e   :  { %1243 = verf.f32 %v538_v32 }
 0x46f   :  { %1210 = vmatpush3.bf16.msra.mxu1 %v1209_v46 }
 0x470   :  { %1211 = vmatprep.subr.bf16.mxu1 %v1276_v0 }
 0x473   :  { %1213 = vmatpush3.bf16.msra.mxu1 %v1212_v49 }
 0x474   :  { %1214 = vmatprep.subr.bf16.mxu1 %v1276_v0 }
 0x477   :  { %1216 = vmatpush3.bf16.msra.mxu1 %v1215_v52 }
 0x478   :  { %v1244_v33 = vpop.eup %1243  ;;  %1217 = vmatprep.subr.bf16.mxu1 %v1276_v0 }
 0x479   :  { %v540_v35 = vadd.f32 1.0, %v1244_v33 }
 0x47b   :  { %v541_v36 = vmul.f32 %v540_v35, %v537_v34  ;;  %1219 = vmatpush3.bf16.msra.mxu1 %v1218_v55 }
 0x47c   :  { %1220 = vmatprep.subr.bf16.mxu1 %v1276_v0 }
 0x47d   :  { %1042 = vmatmul.mubr.f32.vlgmr.msra.gmra.mrb[4].mxu0 %v541_v36 }
 0x47f   :  { %1222 = vmatpush3.bf16.msra.mxu1 %v1221_v58 }
 0x550   :  { %v625_v59 = vpop.f32.mrb[4].mxu0 }
 0x551   :  { %v629_v60 = vrot.slane %v625_v59, 4  ;;  %v636_v61 = vmul.f32 %v625_v59, %v625_v59  ;;  %v1043_v62 = vpop.f32.mrb[5].mxu0 }
 0x553   :  { %v630_v63 = vadd.f32 %v629_v60, %v625_v59  ;;  %v637_v2 = vrot.slane %v636_v61, 4 }
 0x555   :  { %v631_v3 = vrot.slane %v630_v63, 2  ;;  %v638_v4 = vadd.f32 %v637_v2, %v636_v61 }
 0x557   :  { %v632_v5 = vadd.f32 %v631_v3, %v630_v63  ;;  %v639_v6 = vrot.slane %v638_v4, 2 }
 0x559   :  { %v633_v7 = vrot.slane %v632_v5, 1  ;;  %v640_v8 = vadd.f32 %v639_v6, %v638_v4 }
 0x55b   :  { %v634_v9 = vadd.f32 %v633_v7, %v632_v5  ;;  %v641_v10 = vrot.slane %v640_v8, 1 }
 0x55d   :  { %v635_v13 = vmul.f32 0.125, %v634_v9  ;;  %v642_v14 = vadd.f32 %v641_v10, %v640_v8 }
 0x55f   :  { %v643_v16 = vmul.f32 0.125, %v642_v14  ;;  %v644_v18 = vmul.f32 %v635_v13, %v635_v13 }
 0x561   :  { %v645_v0 = vsub.f32 %v643_v16, %v644_v18 }
 0x563   :  { %v646_v19 = vmax.f32 %v645_v0, 0.0 }
 0x565   :  { %v647_v21 = vadd.f32 1e-05, %v646_v19 }
 0x567   :  { %1245 = vrsqrt.f32 %v647_v21 }
 0x571   :  { %v1246_v22 = vpop.eup %1245 }
 0x572   :  { %v649_v23 = vmul.f32 %v1246_v22, %v1343_v12  ;;  %v690_v12 = vrot.slane %v1397_v25, %v401_v20 }
 0x574   :  { %v650_v26 = vmul.f32 %v649_v23, %v635_v13  ;;  %v658_v28 = vrot.slane %v649_v23, %v657_v24 }
 0x576   :  { %v652_v27 = vrot.slane %v650_v26, 3  ;;  %v659_v30 = vmul.f32 %v658_v28, %v625_v59 }
 0x578   :  { %v654_v29 = vsub.f32 %v1397_v25, %v652_v27 }
 0x57a   :  { %v663_v31 = vrot.slane %v654_v29, %v273_v17 }
 0x57c   :  { %v664_v32 = vadd.f32 %v663_v31, %v659_v30 }
 0x57e   :  { %v666_v33 = vmul.f32 0.70710677, %v664_v32  ;;  %v665_v35 = vmul.f32 0.5, %v664_v32 }
 0x580   :  { %1247 = verf.f32 %v666_v33 }
 0x58a   :  { %v1248_v34 = vpop.eup %1247 }
 0x58b   :  { %v668_v36 = vadd.f32 1.0, %v1248_v34 }
 0x58d   :  { %v669_v37 = vmul.f32 %v668_v36, %v665_v35 }
 0x58f   :  { %1077 = vmatmul.mubr.f32.vlgmr.msra.gmra.mrb[4].mxu1 %v669_v37 }
 0x662   :  { %v757_v38 = vpop.f32.mrb[4].mxu1 }
 0x663   :  { %v758_v39 = vadd.f32 %v757_v38, %v690_v12  ;;  %v1078_v40 = vpop.f32.mrb[5].mxu1 }
 0x665   :  { %761 = vst [vmem:[%s1423_s3] sm:$0xff] %v758_v39 }
 0x666   :  { %766 = vsyncpa [#allocation3], 1 }

</bundles_post_ra>
